<compile_context>
chip_gen: v6e
topology: v6e:2x2x1
jax: 0.10.0
libtpu: 0.0.40
codegen_flags: <defaults>
</compile_context>

<pallas_src>
import math

import jax
import jax.numpy as jnp
from jax.experimental import pallas as pl
from jax.experimental.pallas import tpu as pltpu

_LANE = 128
_TARGET_BLOCK_BYTES = 4 * 1024 * 1024      # ~4 MiB per x block (review: 2-8 MiB)
_VMEM_LIMIT_BYTES = 48 * 1024 * 1024       # ~6 live blocks (~24 MiB) + headroom, < 64 MiB (v7x)


def make_positional_encoding(d_model: int, max_seq_length: int,
                             dtype=jnp.float32) -> jnp.ndarray:
    """Same math as the PyTorch __init__ (computed in f32)."""
    position = jnp.arange(0, max_seq_length, dtype=jnp.float32)[:, None]          # [L, 1]
    div_term = jnp.exp(
        jnp.arange(0, d_model, 2, dtype=jnp.float32) * -(math.log(10000.0) / d_model)
    )                                                                               # [D/2]
    angles = position * div_term                                                    # [L, D/2]
    pe = jnp.stack([jnp.sin(angles), jnp.cos(angles)], axis=-1)                     # [L, D/2, 2]
    pe = pe.reshape(max_seq_length, d_model)                                        # [L, D]
    return pe[None, :, :].astype(dtype)                                             # [1, L, D]


def _pe_add_kernel(x_ref, pe_ref, o_ref):
    # pe stays in its stored dtype; the add promotes (f32 when pe is f32), and the
    # sum is cast to the activation/output dtype -> matches the PyTorch reference.
    o_ref[...] = (x_ref[...] + pe_ref[...]).astype(o_ref.dtype)


def _sublane_align(dtype) -> int:
    # native tile second-minor: 8 (f32) / 16 (bf16) / 32 (int8, fp8)
    return max(8, 32 // jnp.dtype(dtype).itemsize)


def _tile_rows(total_rows: int, row_bytes: int, align: int) -> int:
    """Rows per block: aligned, sized toward the byte target; full extent if it
    already fits (a full-extent block is always a legal shape)."""
    target = (_TARGET_BLOCK_BYTES // max(row_bytes, 1)) // align * align
    target = max(target, align)
    if total_rows <= target:
        return total_rows
    return target  # ragged last block handled by pl.cdiv grid


def _dim_semantics(seq_tiles: int):
    # Prefer sharding the seq-tile axis across TCs so each core keeps the
    # batch-innermost iteration order (pe block reused, no re-DMA per batch).
    if seq_tiles >= 2:
        return ("parallel", "arbitrary")
    return ("arbitrary", "parallel")


def _cost(B, S, D, x_itemsize, pe_itemsize) -> pl.CostEstimate:
    return pl.CostEstimate(
        flops=B * S * D,
        transcendentals=0,
        bytes_accessed=2 * B * S * D * x_itemsize + S * D * pe_itemsize,
    )


def _tiled_add(x3: jnp.ndarray, pe3: jnp.ndarray, cost: pl.CostEstimate,
               align: int) -> jnp.ndarray:
    """x3: [B, R, C], pe3: [1, Rp, C] with Rp >= R. Returns x3 + pe3[:, :R]."""
    B, R, C = x3.shape
    ts = _tile_rows(R, C * jnp.dtype(x3.dtype).itemsize, align)
    seq_tiles = pl.cdiv(R, ts)
    return pl.pallas_call(
        _pe_add_kernel,
        out_shape=jax.ShapeDtypeStruct((B, R, C), x3.dtype),
        grid_spec=pltpu.PrefetchScalarGridSpec(
            num_scalar_prefetch=0,
            grid=(seq_tiles, B),                                   # batch innermost
            in_specs=[
                pl.BlockSpec((1, ts, C), lambda s, b: (b, s, 0)),  # x tile
                pl.BlockSpec((1, ts, C), lambda s, b: (0, s, 0)),  # pe rows s*ts..
            ],
            out_specs=pl.BlockSpec((1, ts, C), lambda s, b: (b, s, 0)),
        ),
        compiler_params=pltpu.CompilerParams(
            dimension_semantics=_dim_semantics(seq_tiles),
            vmem_limit_bytes=_VMEM_LIMIT_BYTES,
        ),
        cost_estimate=cost,
    )(x3, pe3)


def positional_encoding_forward(x: jnp.ndarray, pe: jnp.ndarray) -> jnp.ndarray:
    """x: [B, S, D], pe: [1, max_seq, D]  ->  x + pe[:, :S]  (shape [B, S, D])."""
    B, S, D = x.shape
    _, L, Dp = pe.shape
    assert Dp == D and L >= S, "pe buffer does not cover this input"

    x_itemsize = jnp.dtype(x.dtype).itemsize
    pe_itemsize = jnp.dtype(pe.dtype).itemsize
    align = max(_sublane_align(x.dtype), _sublane_align(pe.dtype))
    cost = _cost(B, S, D, x_itemsize, pe_itemsize)

    # ---- Path A: lane-dense feature dim (the real transformer case, d_model % 128 == 0).
    # Full pe buffer passed untouched (no wrapper-side copy or dtype cast).
    if D % _LANE == 0:
        return _tiled_add(x, pe, cost, align)

    # ---- Path B: small / unaligned d_model. Flatten (S, D) into 128-lane rows so the
    # output is lane-dense (full unmasked vst) instead of masked partial stores.
    if (S * D) % _LANE == 0:
        rows = (S * D) // _LANE
        x3 = x.reshape(B, rows, _LANE)                 # contiguous -> free reshape
        pe3 = pe[:, :S, :].reshape(1, rows, _LANE)     # tiny S*D-element slice, dtype kept
        out = _tiled_add(x3, pe3, cost, align)
        return out.reshape(B, S, D)

    # ---- Path C: fallback for shapes where S*D is not a multiple of 128.
    # Keeps D as the full-extent last block dim (legal), tiles S with ragged blocks.
    return _tiled_add(x, pe, cost, align)


if __name__ == "__main__":
    key = jax.random.PRNGKey(0)
    k1, k2, k3, k4 = jax.random.split(key, 4)

    # Test 1: module-sized feature dim (d_model=512) -> lane-dense Path A, f32.
    B, S, D, L = 2, 8, 512, 16
    pe = make_positional_encoding(D, L)
    x = jax.random.normal(k1, (B, S, D), dtype=jnp.float32)
    out = jax.block_until_ready(positional_encoding_forward(x, pe))
    ref = x + pe[:, :S]
    assert out.shape == x.shape and out.dtype == x.dtype
    assert jnp.allclose(out, ref, atol=1e-6), "mismatch vs reference (D=512 f32 path)"

    # Test 2: bf16 activations with f32 pe table -> in-kernel promotion + cast.
    xb = jax.random.normal(k2, (B, S, D), dtype=jnp.float32).astype(jnp.bfloat16)
    outb = jax.block_until_ready(positional_encoding_forward(xb, pe))
    refb = (xb.astype(jnp.float32) + pe[:, :S]).astype(jnp.bfloat16)
    assert outb.dtype == jnp.bfloat16
    assert jnp.allclose(outb.astype(jnp.float32), refb.astype(jnp.float32),
                        atol=1e-2), "mismatch vs reference (bf16 path)"

    # Test 3: small d_model (32) -> flattened 128-lane Path B.
    B2, S2, D2, L2 = 2, 8, 32, 16
    pe2 = make_positional_encoding(D2, L2)
    x2 = jax.random.normal(k3, (B2, S2, D2), dtype=jnp.float32)
    out2 = jax.block_until_ready(positional_encoding_forward(x2, pe2))
    ref2 = x2 + pe2[:, :S2]
    assert out2.shape == x2.shape and out2.dtype == x2.dtype
    assert jnp.allclose(out2, ref2, atol=1e-6), "mismatch vs reference (D=32 path)"

    # Test 4: awkward S*D (not a multiple of 128) -> Path C fallback.
    B3, S3, D3, L3 = 2, 5, 24, 16
    pe3 = make_positional_encoding(D3, L3)
    x3 = jax.random.normal(k4, (B3, S3, D3), dtype=jnp.float32)
    out3 = jax.block_until_ready(positional_encoding_forward(x3, pe3))
    ref3 = x3 + pe3[:, :S3]
    assert out3.shape == x3.shape and out3.dtype == x3.dtype
    assert jnp.allclose(out3, ref3, atol=1e-6), "mismatch vs reference (fallback path)"

    print("KERNEL_OK")
</pallas_src>

<mosaic_0001>
module attributes {stable_mosaic.version = 11 : i64} {
  func.func @_pe_add_kernel(%arg0: i32, %arg1: i32, %arg2: memref<1x8x512xf32, #tpu.memory_space<vmem>>, %arg3: memref<1x8x512xf32, #tpu.memory_space<vmem>>, %arg4: memref<1x8x512xf32, #tpu.memory_space<vmem>>) attributes {dimension_semantics = [#tpu.dimension_semantics<arbitrary>, #tpu.dimension_semantics<parallel>], iteration_bounds = array<i64: 1, 2>, scalar_prefetch = 0 : i64, scratch_operands = 0 : i64, tpu.core_type = #tpu.core_type<tc>, window_params = [{transform_indices = @transform_0, window_bounds = array<i64: 1, 8, 512>}, {transform_indices = @transform_1, window_bounds = array<i64: 1, 8, 512>}, {transform_indices = @transform_2, window_bounds = array<i64: 1, 8, 512>}]} {
    %c0 = arith.constant 0 : index
    %c0_0 = arith.constant 0 : index
    %c0_1 = arith.constant 0 : index
    %0 = vector.load %arg2[%c0, %c0_0, %c0_1] : memref<1x8x512xf32, #tpu.memory_space<vmem>>, vector<1x8x512xf32>
    %c0_2 = arith.constant 0 : index
    %c0_3 = arith.constant 0 : index
    %c0_4 = arith.constant 0 : index
    %1 = vector.load %arg3[%c0_2, %c0_3, %c0_4] : memref<1x8x512xf32, #tpu.memory_space<vmem>>, vector<1x8x512xf32>
    %2 = arith.addf %0, %1 : vector<1x8x512xf32>
    %c0_5 = arith.constant 0 : index
    %c0_6 = arith.constant 0 : index
    %c0_7 = arith.constant 0 : index
    %3 = vector.load %arg4[%c0_5, %c0_6, %c0_7] : memref<1x8x512xf32, #tpu.memory_space<vmem>>, vector<1x8x512xf32>
    tpu.vector_store %arg4[%c0_5, %c0_6, %c0_7], %2 {strides = array<i32>} : memref<1x8x512xf32, #tpu.memory_space<vmem>>, vector<1x8x512xf32>,
    return
  }
  func.func @transform_0(%arg0: i32, %arg1: i32) -> (i32, i32, i32) {
    %c0_i32 = arith.constant 0 : i32
    %c0_i32_0 = arith.constant 0 : i32
    return %arg1, %arg0, %c0_i32 : i32, i32, i32
  }
  func.func @transform_1(%arg0: i32, %arg1: i32) -> (i32, i32, i32) {
    %c0_i32 = arith.constant 0 : i32
    %c0_i32_0 = arith.constant 0 : i32
    %c0_i32_1 = arith.constant 0 : i32
    return %c0_i32, %arg0, %c0_i32_0 : i32, i32, i32
  }
  func.func @transform_2(%arg0: i32, %arg1: i32) -> (i32, i32, i32) {
    %c0_i32 = arith.constant 0 : i32
    %c0_i32_0 = arith.constant 0 : i32
    return %arg1, %arg0, %c0_i32 : i32, i32, i32
  }
}

</mosaic_0001>

<bundles_post_ra>
// kernel: tpu_custom_call.1
= control target key start
LH: loop header
LB: loop body
LE: loop exit
PB: predicated region body
PF: predicated region fallthrough
CT: control target
= control target key end

     0   :  { %7 = vsyncpa [#allocation3], 0  ;;  %s751_s0 = inlined_call_operand.hbm [shape: f32[2,8,512], index: 0, kind: input, shape index: {}]   ;;  %s752_s1 = inlined_call_operand.hbm [shape: f32[1,16,512], index: 1, kind: input, shape index: {}]   ;;  %s753_s2 = inlined_call_operand.hbm [shape: f32[2,8,512], index: 2, kind: output, shape index: {}]  }
   0x1   :  { %9 = vsyncpa [#allocation3 + $0x1], 0 }
   0x2   :  { %10 = vsyncpa [#allocation6], 0 }
   0x3   :  { %11 = vsyncpa [#allocation4], 0 }
   0x4   :  { %13 = vsyncpa [#allocation4 + $0x1], 0  ;;  %s578_s9 = smov 0   ;;  %s580_s10 = smov 0  }
   0x5   :  { %s582_s11 = smov 0   ;;  %s584_s12 = smov 0  }
   0x6   :  { %s586_s13 = smov 0   ;;  %s588_s14 = smov 0  }
   0x7 LB: > { %s328_s15 = sadd.s32 4294967295, %s558_s14   ;;  %s329_s16 = sadd.s32 4294967294, %s558_s14   ;;  %s558_s14 = sphi %s588_s14, %s19_s14   ;;  %s554_s13 = sphi %s586_s13, %s770_s13   ;;  %s550_s12 = sphi %s584_s12, %s769_s12   ;;  %s546_s11 = sphi %s582_s11, %s768_s11   ;;  %s542_s10 = sphi %s580_s10, %s767_s10   ;;  %s538_s9 = sphi %s578_s9, %s766_s9  }
   0x8   : > { %p53_p0 = scmp.ne.s32.totalorder %s542_s10, %s538_s9  ;;  %p612_p1 = scmp.eq.s32.totalorder %s328_s15, 0 }
   0x9   : > { %p616_p2 = scmp.eq.s32.totalorder %s328_s15, 1  ;;  %p111_p3 = scmp.eq.s32.totalorder %s329_s16, 1 }
   0xa   : > { %p622_p4 = por %p612_p1, %p53_p0  ;;  %p330_p5 = scmp.ge.s32.totalorder %s558_s14, 1 }
   0xb   : > { %p627_p6 = por %p111_p3, %p53_p0  ;;  %p118_p7 = scmp.lt.s32.totalorder %s558_s14, 3 }
   0xc   : > { %s757_s19 = scalar_select %p622_p4, 1, 0 }
   0xd   : > { %s758_s20 = scalar_select %p627_p6, 1, 0 }
   0xe   : > { %p632_p8 = pnand %p330_p5, %p118_p7  ;;  %s560_s22 = smov [#allocation5]  }
   0xf   : > { %s134_s23 = sshll.u32 %s560_s22, 4  ;;  %s28_s25 = sadd.s32 1, %s554_s13  ;;  %s135_s23 = int_to_ptr.vmem [resolvable:$true] %s134_s23 }
  0x10   : > { %p355_p10 = pneg %p632_p8  ;;  %s40_s26 = sadd.s32 1, %s546_s11 }
  0x11   : > { %p29_p12 = scmp.ge.s32.totalorder %s28_s25, 2  ;;  %s431_s27 = scalar_lea.vmem %s135_s23, 512 }
  0x12   : > { %p641_p11 = pnand %p355_p10, %p612_p1  ;;  %p432_p0 = scmp.ne.s32.totalorder %s135_s23, %s431_s27 }
  0x13   : > { %p439_p7 = scmp.lt.s32.totalorder %s135_s23, %s135_s23  ;;  %p440_p6 = scmp.lt.s32.totalorder %s431_s27, %s431_s27 }
  0x14   : > { %p422_p13 = pneg %p641_p11 }
  0x15   : > { %p441_p9 = por %p440_p6, %p439_p7 }
  0x16   : > { %p434_p3 = pnand %p432_p0, %p422_p13 }
  0x18   : > { %p435_p5 = pneg %p434_p3 }
  0x1a   : > { %p442_p4 = pnand %p441_p9, %p435_p5 }
  0x1c   : > { %445 = shalt.err (!%p442_p4)
}
  0x1d   : > { %358 = dma.hbm_to_vmem [thread:$0]  (!%p641_p11), %s752_s1, 512, %s135_s23, [#allocation6]  }
  0x1e   : > { %s772_s25 = smov (%p29_p12, %s28_s25), 0  ;;  %p47_p6 = scmp.ne.s32.totalorder %s546_s11, %s542_s10 }
  0x1f   : > { %p48_p4 = scmp.eq.s32.totalorder %s558_s14, 0  ;;  %s35_s30 = ssub.s32 %s554_s13, %s772_s25 }
  0x20   : > { %p368_p9 = scmp.lt.s32.totalorder %s558_s14, 2  ;;  %p38_p10 = scmp.eq.s32.totalorder %s35_s30, 0 }
  0x21   : > { %p49_p13 = por %p48_p4, %p47_p6  ;;  %p664_p0 = por %p616_p2, %p47_p6 }
  0x22   : > { %s145_s4 = sand.u32 1, %s546_s11   ;;  %s345_s7 = sshll.u32 %s554_s13, 9 }
  0x23   : > { %s670_s5 = scalar_select %p38_p10, %s546_s11, %s40_s26  }
  0x24   : > { %s333_s6 = sshll.u32 %s145_s4, 5  ;;  %s157_s16 = scalar_lea.hbm %s751_s0, %s345_s7 }
  0x25   : > { %s149_s22 = scalar_lea.vmem [#allocation2], %s333_s6  ;;  %p676_p11 = pnand %p368_p9, %p49_p13 }
  0x26   : > { %s159_s23 = sshll.u32 %s149_s22, 4  ;;  %s146_s18 = scalar_lea.sflag [#allocation3], %s145_s4  ;;  %s160_s23 = int_to_ptr.vmem [resolvable:$true] %s159_s23 }
  0x27   : > { %p448_p2 = pneg %p676_p11  ;;  %s459_s27 = scalar_lea.vmem %s160_s23, 512 }
  0x28   : > { %p460_p12 = scmp.ne.s32.totalorder %s160_s23, %s459_s27  ;;  %s561_s26 = smov [#allocation2]  }
  0x29   : > { %s464_s28 = sshll.u32 %s561_s26, 4  ;;  %s465_s28 = int_to_ptr.vmem [resolvable:$false] %s464_s28 }
  0x2a   : > { %p462_p3 = pnand %p460_p12, %p448_p2  ;;  %s466_s29 = scalar_lea.vmem %s465_s28, 1024 }
  0x2b   : > { %p467_p7 = scmp.lt.s32.totalorder %s160_s23, %s465_s28  ;;  %p468_p6 = scmp.lt.s32.totalorder %s466_s29, %s459_s27 }
  0x2c   : > { %p463_p5 = pneg %p462_p3 }
  0x2d   : > { %p469_p4 = por %p468_p6, %p467_p7 }
  0x2f   : > { %p470_p10 = pnand %p469_p4, %p463_p5 }
  0x31   : > { %473 = shalt.err (!%p470_p10)
}
  0x32   : > { %362 = dma.hbm_to_vmem [thread:$0]  (!%p676_p11), %s157_s16, 512, %s160_s23, %s146_s18  }
  0x33   : > { %168 = sbr.rel (%p632_p8) target bundleno = 83 (0x53), region = 28  ;;  %s687_s30 = sand.u32 (!%p632_p8), 1, %s542_s10  }
  0x34   : > { %s337_s4 = sshll.u32 (!%p632_p8), %s687_s30, 5  ;;  %s171_s6 = scalar_lea.sflag (!%p632_p8), [#allocation3], %s687_s30 }
  0x35   : > { %s174_s7 = scalar_lea.vmem (!%p632_p8), [#allocation2], %s337_s4  ;;  %p763_p9 = scmp.ne.s32.totalorder (!%p632_p8), %s757_s19, 0 }
  0x38   : > { %525 = dma.done.wait (%p763_p9), %s171_s6, 512  }
  0x39   : > { %527 = vsyncadd (%p763_p9), %s171_s6, 4294966784 }
  0x3a   : > { %529 = dma.done.wait (%p612_p1), [#allocation6], 512  }
  0x3b   : > { %531 = vsyncadd (%p612_p1), [#allocation6], 4294966784  ;;  %v199_v0 = vld [vmem:[%s174_s7] sm:$0xff]  ;;  %s198_s21 = scalar_lea.vmem [#allocation7], %s337_s4  ;;  %v200_v2 = vld [vmem:[%s174_s7 + $0x8] sm:$0xff]  ;;  %s346_s15 = sshll.u32 %s550_s12, 9 }
  0x3c   : > { %v203_v1 = vld [vmem:[#allocation5] sm:$0xff]  ;;  %s232_s8 = sshll.u32 %s198_s21, 4  ;;  %v204_v4 = vld [vmem:[#allocation5 + $0x8] sm:$0xff]  ;;  %v201_v5 = vld [vmem:[%s174_s7 + $0x10] sm:$0xff]  ;;  %s705_s12 = scalar_lea.hbm %s753_s2, %s346_s15  ;;  %s700_s8 = int_to_ptr.vmem [resolvable:$true] %s232_s8 }
  0x3d   : > { %v207_v3 = vadd.f32 %v203_v1, %v199_v0  ;;  %v205_v6 = vld [vmem:[#allocation5 + $0x10] sm:$0xff]  ;;  %v208_v7 = vadd.f32 %v204_v4, %v200_v2  ;;  %v202_v9 = vld [vmem:[%s174_s7 + $0x18] sm:$0xff]  ;;  %s216_s16 = scalar_lea.sflag [#allocation4], %s687_s30  ;;  %s474_s22 = scalar_lea.vmem %s700_s8, 512 }
  0x3e   : > { %v209_v8 = vadd.f32 %v205_v6, %v201_v5  ;;  %v206_v10 = vld [vmem:[#allocation5 + $0x18] sm:$0xff]  ;;  %p475_p1 = scmp.ne.s32.totalorder %s700_s8, %s474_s22  ;;  %s562_s23 = smov [#allocation7]  }
  0x3f   : > { %211 = vst [vmem:[%s198_s21] sm:$0xff] %v207_v3  ;;  %v210_v11 = vadd.f32 %v206_v10, %v202_v9  ;;  %212 = vst [vmem:[%s198_s21 + $0x8] sm:$0xff] %v208_v7  ;;  %s478_s24 = sshll.u32 %s562_s23, 4  ;;  %s479_s24 = int_to_ptr.vmem [resolvable:$false] %s478_s24 }
  0x40   : > { %213 = vst [vmem:[%s198_s21 + $0x10] sm:$0xff] %v209_v8  ;;  %p476_p8 = pnand %p475_p1, %p664_p0  ;;  %s480_s18 = scalar_lea.vmem %s479_s24, 1024 }
  0x41   : > { %214 = vst [vmem:[%s198_s21 + $0x18] sm:$0xff] %v210_v11  ;;  %p481_p11 = scmp.lt.s32.totalorder %s700_s8, %s479_s24  ;;  %p482_p2 = scmp.lt.s32.totalorder %s480_s18, %s474_s22 }
  0x42   : > { %p477_p13 = pneg %p476_p8 }
  0x43   : > { %p483_p12 = por %p482_p2, %p481_p11 }
  0x45   : > { %p484_p3 = pnand %p483_p12, %p477_p13 }
  0x47   : > { %487 = shalt.err (!%p484_p3)
}
  0x48   : > { %s488_s27 = scalar_lea.hbm %s705_s12, 512  ;;  %s492_s29 = scalar_lea.hbm %s753_s2, 1024 }
  0x49   : > { %p489_p5 = scmp.ne.s32.totalorder %s705_s12, %s488_s27  ;;  %p493_p4 = scmp.lt.s32.totalorder %s705_s12, %s753_s2 }
  0x4a   : > { %p494_p10 = scmp.lt.s32.totalorder %s492_s29, %s488_s27 }
  0x4b   : > { %p490_p7 = pnand %p489_p5, %p664_p0 }
  0x4c   : > { %p495_p9 = por %p494_p10, %p493_p4 }
  0x4d   : > { %p491_p6 = pneg %p490_p7 }
  0x4f   : > { %p496_p1 = pnand %p495_p9, %p491_p6 }
  0x51   : > { %499 = shalt.err (!%p496_p1)
}
  0x52   : > { %353 = dma.vmem_to_hbm [thread:$0]  (%p664_p0), %s700_s8, 512, %s705_s12, %s216_s16  }
  0x53 PF: > { %s244_s6 = sand.u32 1, %s538_s9   ;;  %p764_p8 = scmp.ne.s32.totalorder %s758_s20, 0 }
  0x54   : > { %p765_p13 = scmp.ge.s32.totalorder %s558_s14, 2  ;;  %s245_s7 = scalar_lea.sflag [#allocation4], %s244_s6 }
  0x56   : > { %p364_p11 = pnand %p765_p13, %p764_p8 }
  0x58   : > { %p365_p2 = pneg %p364_p11 }
  0x5a   : > { %533 = dma.done.wait (%p365_p2), %s245_s7, 512  }
  0x5b   : > { %535 = vsyncadd (%p365_p2), %s245_s7, 4294966784  ;;  %s19_s14 = sadd.s32 1, %s558_s14   ;;  %s766_s9 = smov %s542_s10 }
  0x5c   : > { %p16_p12 = scmp.ge.s32.totalorder %s19_s14, 4   ;;  %s767_s10 = smov %s546_s11 }
  0x5d   : > { %s768_s11 = smov %s670_s5  ;;  %s769_s12 = smov %s554_s13 }
  0x5e   : > { %s770_s13 = smov %s772_s25  ;;  %18 = sbr.rel (!%p16_p12) target bundleno = 7 (0x7), region = 78 }
  0x63   :  { %250 = vsyncpa [#allocation3], 1 }
  0x64   :  { %252 = vsyncpa [#allocation3 + $0x1], 1 }
  0x65   :  { %253 = vsyncpa [#allocation6], 1 }
  0x66   :  { %254 = vsyncpa [#allocation4], 1 }
  0x67   :  { %256 = vsyncpa [#allocation4 + $0x1], 1 }

</bundles_post_ra>
